<compile_context>
chip_gen: v7x
topology: tpu7x:2x2x1
jax: 0.10.0
libtpu: 0.0.40
codegen_flags: <defaults>
</compile_context>

<pallas_src>
import jax
import jax.numpy as jnp
from jax.experimental import pallas as pl
from jax.experimental.pallas import tpu as pltpu

NUM_HIDDEN1 = 470          # logical hidden width (matches the PyTorch module)
NUM_OUTPUT = 2             # logical output width
HIDDEN_PAD = 512           # hidden width padded to a multiple of 128 lanes
OUT_PAD = 128              # output width padded to one full lane group
TILE_CAP = 1024            # max batch-tile rows (sweepable 512..2048; VMEM ~1.4 MiB at 1024)


def _cdiv(a, b):
    return -(-a // b)


def _round_up(x, m):
    return _cdiv(x, m) * m


def _choose_tile(batch, cap=TILE_CAP):
    """Pick (tile_b, num_tiles): tile_b a multiple of 16 (bf16 sublane pack),
    padding waste <= ~one tile, and an EVEN tile count so v7x's two
    TensorCores both get work via the 'parallel' grid axis."""
    n_tiles = max(2, _cdiv(batch, cap))
    if n_tiles % 2:
        n_tiles += 1
    tile_b = min(cap, _round_up(_cdiv(batch, n_tiles), 16))
    grid_n = _cdiv(batch, tile_b)
    if grid_n % 2:
        grid_n += 1
    return tile_b, grid_n


def mlp_kernel(x_ref, w1_ref, b1_ref, w2_ref, b2_ref, o_ref):
    # fc1: bf16 x bf16 MXU matmul with f32 accumulation.
    x = x_ref[...].astype(jnp.bfloat16)                       # no-op when fed bf16
    h = jnp.dot(x, w1_ref[...], preferred_element_type=jnp.float32)
    # bias + ReLU on the f32 accumulator (VPU), biases kept in f32.
    h = jnp.maximum(h + b1_ref[...], 0.0)                     # (TB, 512) + (1, 512)
    # fc3: bf16 x bf16 MXU matmul with f32 accumulation; 128 padded out lanes
    # keep the store unmasked / lane-dense.
    out = jnp.dot(h.astype(jnp.bfloat16), w2_ref[...],
                  preferred_element_type=jnp.float32)
    o_ref[...] = (out + b2_ref[...]).astype(o_ref.dtype)      # bf16 store (TB, 128)


def mlp_forward_padded(x, w1_p, b1_p, w2_p, b2_p):
    """Canonical kernel entry point.

    x: (B, K) any float dtype.  Padded bf16/f32 params from pad_params().
    Returns the padded bf16 slab of shape (b_pad, OUT_PAD); only
    [:B, :NUM_OUTPUT] is meaningful.  Consumers should fuse the slice.
    """
    B, K = x.shape
    H = w1_p.shape[1]          # HIDDEN_PAD
    OP = w2_p.shape[1]         # OUT_PAD

    if x.dtype != jnp.bfloat16:
        # Callers that already hold bf16 activations skip this cast entirely.
        x = x.astype(jnp.bfloat16)

    tile_b, grid_n = _choose_tile(B)
    b_pad = tile_b * grid_n
    if b_pad != B:
        x = jnp.pad(x, ((0, b_pad - B), (0, 0)))

    # Truthful cost hint: logical FLOPs (470-wide hidden, 2-wide fc3) and the
    # actual bf16/f32 bytes that cross HBM.
    flops = 2 * b_pad * (K * NUM_HIDDEN1 + NUM_HIDDEN1 * NUM_OUTPUT)
    bytes_accessed = (
        2 * b_pad * K            # x, bf16
        + 2 * K * H              # w1, bf16
        + 4 * H                  # b1, f32
        + 2 * H * OP             # w2, bf16
        + 4 * OP                 # b2, f32
        + 2 * b_pad * OP         # out, bf16
    )

    out = pl.pallas_call(
        mlp_kernel,
        out_shape=jax.ShapeDtypeStruct((b_pad, OP), jnp.bfloat16),
        grid=(grid_n,),
        in_specs=[
            # activations: march over batch tiles
            pl.BlockSpec((tile_b, K), lambda i: (i, 0)),
            # weights / biases: constant block index -> stay VMEM-resident
            pl.BlockSpec((K, H), lambda i: (0, 0)),
            pl.BlockSpec((1, H), lambda i: (0, 0)),
            pl.BlockSpec((H, OP), lambda i: (0, 0)),
            pl.BlockSpec((1, OP), lambda i: (0, 0)),
        ],
        out_specs=pl.BlockSpec((tile_b, OP), lambda i: (i, 0)),
        compiler_params=pltpu.CompilerParams(
            dimension_semantics=("parallel",),   # shard batch tiles across TCs
        ),
        cost_estimate=pl.CostEstimate(
            flops=flops, transcendentals=0, bytes_accessed=bytes_accessed
        ),
    )(x, w1_p, b1_p, w2_p, b2_p)
    return out


def mlp_forward(x, w1_p, b1_p, w2_p, b2_p):
    """Convenience wrapper returning the logical (B, NUM_OUTPUT) result in f32.
    The slice/upcast is a tiny extra pass; performance-critical consumers
    should call mlp_forward_padded() and fuse the slice themselves."""
    B = x.shape[0]
    out = mlp_forward_padded(x, w1_p, b1_p, w2_p, b2_p)
    return out[:B, :NUM_OUTPUT].astype(jnp.float32)


def init_params(key, num_input):
    # Deterministic init mimicking PyTorch nn.Linear default:
    # U(-1/sqrt(fan_in), +1/sqrt(fan_in)) for both weight and bias.
    # Stored in (in, out) layout (already transposed vs. PyTorch's (out, in)).
    k1, k2, k3, k4 = jax.random.split(key, 4)
    bound1 = 1.0 / jnp.sqrt(float(num_input))
    bound2 = 1.0 / jnp.sqrt(float(NUM_HIDDEN1))
    w1_t = jax.random.uniform(k1, (num_input, NUM_HIDDEN1), jnp.float32, -bound1, bound1)
    b1 = jax.random.uniform(k2, (NUM_HIDDEN1,), jnp.float32, -bound1, bound1)
    w2_t = jax.random.uniform(k3, (NUM_HIDDEN1, NUM_OUTPUT), jnp.float32, -bound2, bound2)
    b2 = jax.random.uniform(k4, (NUM_OUTPUT,), jnp.float32, -bound2, bound2)
    return w1_t, b1, w2_t, b2


def pad_params(w1_t, b1, w2_t, b2):
    """Zero-pad params to lane-dense shapes (done once, outside the hot path).
    Weights are stored bf16 (streamed operands); biases stay f32 (added to the
    f32 accumulator, negligible bytes).  Padding is exact: ReLU(0+0)=0 and the
    padded hidden units hit zero rows of w2; padded output lanes are zero."""
    K = w1_t.shape[0]
    w1_p = jnp.zeros((K, HIDDEN_PAD), jnp.float32).at[:, :NUM_HIDDEN1].set(w1_t)
    b1_p = jnp.zeros((1, HIDDEN_PAD), jnp.float32).at[0, :NUM_HIDDEN1].set(b1)
    w2_p = jnp.zeros((HIDDEN_PAD, OUT_PAD), jnp.float32).at[:NUM_HIDDEN1, :NUM_OUTPUT].set(w2_t)
    b2_p = jnp.zeros((1, OUT_PAD), jnp.float32).at[0, :NUM_OUTPUT].set(b2)
    return w1_p.astype(jnp.bfloat16), b1_p, w2_p.astype(jnp.bfloat16), b2_p


if __name__ == "__main__":
    NUM_INPUT = 32
    BATCH = 8

    key = jax.random.PRNGKey(0)
    kx, kp = jax.random.split(key)
    x = jax.random.normal(kx, (BATCH, NUM_INPUT), jnp.float32)

    w1_t, b1, w2_t, b2 = init_params(kp, NUM_INPUT)
    w1_p, b1_p, w2_p, b2_p = pad_params(w1_t, b1, w2_t, b2)

    fwd = jax.jit(mlp_forward)
    out = fwd(x, w1_p, b1_p, w2_p, b2_p)
    out = jax.block_until_ready(out)

    # Pure-JAX f32 reference of the original forward math.  Tolerance relaxed
    # because the kernel streams x / weights / output in bfloat16.
    ref = jnp.maximum(x @ w1_t + b1[None, :], 0.0) @ w2_t + b2[None, :]
    assert out.shape == (BATCH, NUM_OUTPUT)
    assert jnp.allclose(out, ref, atol=5e-2, rtol=5e-2), (
        f"max abs err {float(jnp.max(jnp.abs(out - ref)))}")

    print("KERNEL_OK")
</pallas_src>

<mosaic_0001>
module attributes {stable_mosaic.version = 11 : i64} {
  func.func @mlp_kernel(%arg0: i32, %arg1: memref<16x32xbf16, #tpu.memory_space<vmem>>, %arg2: memref<32x512xbf16, #tpu.memory_space<vmem>>, %arg3: memref<1x512xf32, #tpu.memory_space<vmem>>, %arg4: memref<512x128xbf16, #tpu.memory_space<vmem>>, %arg5: memref<1x128xf32, #tpu.memory_space<vmem>>, %arg6: memref<16x128xbf16, #tpu.memory_space<vmem>>) attributes {dimension_semantics = [#tpu.dimension_semantics<parallel>], iteration_bounds = array<i64: 2>, scalar_prefetch = 0 : i64, scratch_operands = 0 : i64, tpu.core_type = #tpu.core_type<tc>, window_params = [{transform_indices = @transform_0, window_bounds = array<i64: 16, 32>}, {pipeline_mode = #tpu.pipeline_mode<synchronous>, transform_indices = @transform_1, window_bounds = array<i64: 32, 512>}, {pipeline_mode = #tpu.pipeline_mode<synchronous>, transform_indices = @transform_2, window_bounds = array<i64: 1, 512>}, {pipeline_mode = #tpu.pipeline_mode<synchronous>, transform_indices = @transform_3, window_bounds = array<i64: 512, 128>}, {pipeline_mode = #tpu.pipeline_mode<synchronous>, transform_indices = @transform_4, window_bounds = array<i64: 1, 128>}, {transform_indices = @transform_5, window_bounds = array<i64: 16, 128>}]} {
    %c0 = arith.constant 0 : index
    %c0_0 = arith.constant 0 : index
    %0 = vector.load %arg1[%c0, %c0_0] : memref<16x32xbf16, #tpu.memory_space<vmem>>, vector<16x32xbf16>
    %c0_1 = arith.constant 0 : index
    %c0_2 = arith.constant 0 : index
    %1 = vector.load %arg2[%c0_1, %c0_2] : memref<32x512xbf16, #tpu.memory_space<vmem>>, vector<32x512xbf16>
    %cst = arith.constant dense<0.000000e+00> : vector<16x512xf32>
    %2 = tpu.matmul %0, %1, %cst {dimension_numbers = #tpu.dot_dimension_numbers<[1], [0], [0], [1], [0, 0, 1, 1], [], []>} : vector<16x32xbf16>, vector<32x512xbf16>, vector<16x512xf32> -> vector<16x512xf32>
    %c0_3 = arith.constant 0 : index
    %c0_4 = arith.constant 0 : index
    %3 = vector.load %arg3[%c0_3, %c0_4] : memref<1x512xf32, #tpu.memory_space<vmem>>, vector<1x512xf32>
    %4 = vector.broadcast %3 : vector<1x512xf32> to vector<16x512xf32>
    %5 = arith.addf %2, %4 : vector<16x512xf32>
    %cst_5 = arith.constant 0.000000e+00 : f32
    %6 = vector.broadcast %cst_5 : f32 to vector<16x512xf32>
    %7 = arith.maximumf %5, %6 : vector<16x512xf32>
    %8 = arith.truncf %7 : vector<16x512xf32> to vector<16x512xbf16>
    %c0_6 = arith.constant 0 : index
    %c0_7 = arith.constant 0 : index
    %9 = vector.load %arg4[%c0_6, %c0_7] : memref<512x128xbf16, #tpu.memory_space<vmem>>, vector<512x128xbf16>
    %cst_8 = arith.constant dense<0.000000e+00> : vector<16x128xf32>
    %10 = tpu.matmul %8, %9, %cst_8 {dimension_numbers = #tpu.dot_dimension_numbers<[1], [0], [0], [1], [0, 0, 1, 1], [], []>} : vector<16x512xbf16>, vector<512x128xbf16>, vector<16x128xf32> -> vector<16x128xf32>
    %c0_9 = arith.constant 0 : index
    %c0_10 = arith.constant 0 : index
    %11 = vector.load %arg5[%c0_9, %c0_10] : memref<1x128xf32, #tpu.memory_space<vmem>>, vector<1x128xf32>
    %12 = vector.broadcast %11 : vector<1x128xf32> to vector<16x128xf32>
    %13 = arith.addf %10, %12 : vector<16x128xf32>
    %14 = arith.truncf %13 : vector<16x128xf32> to vector<16x128xbf16>
    %c0_11 = arith.constant 0 : index
    %c0_12 = arith.constant 0 : index
    %15 = vector.load %arg6[%c0_11, %c0_12] : memref<16x128xbf16, #tpu.memory_space<vmem>>, vector<16x128xbf16>
    tpu.vector_store %arg6[%c0_11, %c0_12], %14 {strides = array<i32>} : memref<16x128xbf16, #tpu.memory_space<vmem>>, vector<16x128xbf16>,
    return
  }
  func.func @transform_0(%arg0: i32) -> (i32, i32) {
    %c0_i32 = arith.constant 0 : i32
    %c0_i32_0 = arith.constant 0 : i32
    return %arg0, %c0_i32 : i32, i32
  }
  func.func @transform_1(%arg0: i32) -> (i32, i32) {
    %c0_i32 = arith.constant 0 : i32
    %c0_i32_0 = arith.constant 0 : i32
    %c0_i32_1 = arith.constant 0 : i32
    return %c0_i32, %c0_i32_0 : i32, i32
  }
  func.func @transform_2(%arg0: i32) -> (i32, i32) {
    %c0_i32 = arith.constant 0 : i32
    %c0_i32_0 = arith.constant 0 : i32
    %c0_i32_1 = arith.constant 0 : i32
    return %c0_i32, %c0_i32_0 : i32, i32
  }
  func.func @transform_3(%arg0: i32) -> (i32, i32) {
    %c0_i32 = arith.constant 0 : i32
    %c0_i32_0 = arith.constant 0 : i32
    %c0_i32_1 = arith.constant 0 : i32
    return %c0_i32, %c0_i32_0 : i32, i32
  }
  func.func @transform_4(%arg0: i32) -> (i32, i32) {
    %c0_i32 = arith.constant 0 : i32
    %c0_i32_0 = arith.constant 0 : i32
    %c0_i32_1 = arith.constant 0 : i32
    return %c0_i32, %c0_i32_0 : i32, i32
  }
  func.func @transform_5(%arg0: i32) -> (i32, i32) {
    %c0_i32 = arith.constant 0 : i32
    %c0_i32_0 = arith.constant 0 : i32
    return %arg0, %c0_i32 : i32, i32
  }
}

</mosaic_0001>

<bundles_post_ra>
// kernel: mlp_forward.1
= control target key start
LH: loop header
LB: loop body
LE: loop exit
PB: predicated region body
PF: predicated region fallthrough
CT: control target
= control target key end

     0   :  { %10 = vsyncpa [#allocation3], 0  ;;  %s1280_s0 = inlined_call_operand.vmem [shape: bf16[32,32], index: 0, kind: input, shape index: {}]   ;;  %s1281_s1 = inlined_call_operand.hbm [shape: bf16[32,512], index: 1, kind: input, shape index: {}]   ;;  %s1282_s2 = inlined_call_operand.vmem [shape: f32[1,512], index: 2, kind: input, shape index: {}]   ;;  %s1283_s3 = inlined_call_operand.hbm [shape: bf16[512,128], index: 3, kind: input, shape index: {}]   ;;  %s1284_s4 = inlined_call_operand.vmem [shape: f32[1,128], index: 4, kind: input, shape index: {}]   ;;  %s1285_s5 = inlined_call_operand.vmem [shape: bf16[32,128], index: 5, kind: output, shape index: {}]  }
   0x1   :  { %11 = vsyncpa [#allocation5], 0  ;;  %s1171_s18 = smov 0  }
   0x2 LB: > { %s1134_s19 = smov [#allocation2]   ;;  %s871_s21 = sadd.s32 4294967295, %s1132_s18   ;;  %s1132_s18 = sphi %s1171_s18, %s17_s18  }
   0x3   : > { %s170_s20 = sshll.u32 %s1134_s19, 4  ;;  %p873_p0 = scmp.ge.s32.totalorder %s1132_s18, 1  ;;  %s171_s20 = int_to_ptr.vmem [resolvable:$true] %s170_s20 }
   0x4   : > { %p158_p1 = scmp.lt.s32.totalorder %s1132_s18, 3  ;;  %p1185_p3 = scmp.eq.s32.totalorder %s871_s21, 0 }
   0x5   : > { %s1135_s24 = smov [#allocation4]   ;;  %s1062_s29 = scalar_lea.hbm %s1281_s1, 1024 }
   0x6   : > { %p1179_p2 = pnand %p873_p0, %p158_p1  ;;  %s186_s25 = sshll.u32 %s1135_s24, 4  ;;  %s1197_s25 = int_to_ptr.vmem [resolvable:$true] %s186_s25 }
   0x7   : > { %s1290_s23 = scalar_select %p1185_p3, 1, 0 }
   0x8   : > { %s1289_s22 = scalar_select %p1179_p2, 1, 0 }
   0x9   : > { %p991_p4 = pneg %p1179_p2  ;;  %p1063_p6 = scmp.ne.s32.totalorder %s1281_s1, %s1062_s29 }
   0xa   : > { %p1069_p10 = scmp.lt.u32.totalorder %s1062_s29, %s1281_s1 }
   0xb   : > { %p1193_p5 = pnand %p1185_p3, %p991_p4 }
   0xd   : > { %p1064_p7 = pneg %p1193_p5 }
   0xf   : > { %p1065_p8 = pnand %p1064_p7, %p1063_p6 }
  0x11   : > { %p1066_p9 = pneg %p1065_p8 }
  0x13   : > { %p1071_p11 = pnand %p1069_p10, %p1066_p9 }
  0x15   : > { %1074 = shalt.err (!%p1071_p11)
}
  0x16   : > { %s1075_s9 = scalar_lea.vmem %s171_s20, 1024  ;;  %p1083_p1 = scmp.lt.s32.totalorder %s171_s20, %s171_s20 }
  0x17   : > { %p1076_p12 = scmp.ne.s32.totalorder %s171_s20, %s1075_s9  ;;  %p1084_p4 = scmp.lt.s32.totalorder %s1075_s9, %s1075_s9 }
  0x19   : > { %p1078_p13 = pnand %p1076_p12, %p1064_p7  ;;  %p1085_p3 = por %p1084_p4, %p1083_p1 }
  0x1b   : > { %p1079_p0 = pneg %p1078_p13 }
  0x1d   : > { %p1086_p2 = pnand %p1085_p3, %p1079_p0 }
  0x1f   : > { %1089 = shalt.err (!%p1086_p2)
}
  0x20   : > { %s1136_s10 = smov 256   ;;  %s1137_s11 = smov 16  }
  0x21   : > { %994 = dma.hbm_to_vmem [thread:$0]  (!%p1193_p5), %s1281_s1, 1024, %s171_s20, [#allocation3], %s1136_s10, %s1136_s10, %s1137_s11  }
  0x22   : > { %s1090_s16 = scalar_lea.hbm %s1283_s3, 4096 }
  0x23   : > { %p1091_p6 = scmp.ne.s32.totalorder %s1283_s3, %s1090_s16  ;;  %p1097_p8 = scmp.lt.u32.totalorder %s1090_s16, %s1283_s3 }
  0x25   : > { %p1093_p2 = pnand %p1091_p6, %p1064_p7 }
  0x27   : > { %p1094_p3 = pneg %p1093_p2 }
  0x29   : > { %p1099_p9 = pnand %p1097_p8, %p1094_p3 }
  0x2b   : > { %1102 = shalt.err (!%p1099_p9)
}
  0x2c   : > { %s1103_s20 = scalar_lea.vmem %s1197_s25, 4096  ;;  %p1111_p13 = scmp.lt.s32.totalorder %s1197_s25, %s1197_s25 }
  0x2d   : > { %p1104_p10 = scmp.ne.s32.totalorder %s1197_s25, %s1103_s20  ;;  %p1112_p0 = scmp.lt.s32.totalorder %s1103_s20, %s1103_s20 }
  0x2f   : > { %p1106_p11 = pnand %p1104_p10, %p1064_p7  ;;  %p1113_p1 = por %p1112_p0, %p1111_p13 }
  0x31   : > { %p1107_p12 = pneg %p1106_p11 }
  0x33   : > { %p1114_p4 = pnand %p1113_p1, %p1107_p12 }
  0x35   : > { %1117 = shalt.err (!%p1114_p4)
}
  0x36   : > { %s1138_s28 = smov 64   ;;  %s1139_s29 = smov 4  }
  0x37   : > { %997 = dma.hbm_to_vmem [thread:$0]  (!%p1193_p5), %s1283_s3, 4096, %s1197_s25, [#allocation5], %s1138_s28, %s1138_s28, %s1139_s29  }
  0x38   : > { %p1292_p6 = scmp.ne.s32.totalorder %s1289_s22, 0 }
  0x39   : > { %p1293_p7 = scmp.ne.s32.totalorder (!%p1292_p6), %s1290_s23, 0 }
  0x3a   : > { %214 = sbr.rel (%p1292_p6) target bundleno = 524 (0x20c), region = 40 }
  0x41   : > { %1123 = dma.done.wait (%p1293_p7), [#allocation3], 1024  }
  0x42   : > { %1125 = vsyncadd (%p1293_p7), [#allocation3], 4294966272 }
  0x43   : > { %1127 = dma.done.wait (%p1293_p7), [#allocation5], 4096  }
  0x44   : > { %1129 = vsyncadd (%p1293_p7), [#allocation5], 4294963200  ;;  %s880_s26 = sshll.u32 %s871_s21, 1  ;;  %v1140_v0 = vmov 0   ;;  %v1017_v1 = vld [vmem:[#allocation2 + $0x4] ss:$16 sps:$4 sm:$0xff]   ;;  %v271_v42 = vlaneseq }
  0x45   : > { %372 = vmatprep.mubr.bf16.mxu0 %v1140_v0  ;;  %415 = vmatprep.mubr.bf16.mxu1 %v1140_v0  ;;  %p247_p5 = scmp.lt.s32.totalorder %s880_s26, 3  ;;  %v1019_v2 = vld [vmem:[#allocation2 + $0xc] ss:$16 sps:$4 sm:$0xff]   ;;  %v1021_v3 = vld [vmem:[#allocation2] ss:$16 sps:$4 sm:$0xff]   ;;  %vm336_vm0 = vcmask 261120  }
  0x46   : > { %340 = vmatprep.subr.bf16.mxu0 %v1017_v1  ;;  %v1022_v4 = vld [vmem:[#allocation2 + $0x8] ss:$16 sps:$4 sm:$0xff]   ;;  %383 = vmatprep.subr.bf16.mxu1 %v1019_v2  ;;  %v1023_v5 = vld [vmem:[#allocation2 + $0x24] ss:$16 sps:$4 sm:$0xff]   ;;  %v1025_v6 = vld [vmem:[#allocation2 + $0x2c] ss:$16 sps:$4 sm:$0xff]  }
  0x47   : > { %s1295_s26 = smov (!%p247_p5, %s880_s26), 3  ;;  %341 = vmatpush1.bf16.msra.mxu0 %v1021_v3  ;;  %384 = vmatpush1.bf16.msra.mxu1 %v1022_v4  ;;  %v1027_v7 = vld [vmem:[#allocation2 + $0x20] ss:$16 sps:$4 sm:$0xff]   ;;  %v1028_v8 = vld [vmem:[#allocation2 + $0x28] ss:$16 sps:$4 sm:$0xff]   ;;  %v272_v43 = vshrl.u32 %v271_v42, 7 }
  0x48   : > { %s881_s22 = sshll.u32 %s1295_s26, 2  ;;  %342 = vmatprep.subr.bf16.mxu0 %v1023_v5  ;;  %385 = vmatprep.subr.bf16.mxu1 %v1025_v6  ;;  %v1030_v10 = vld [vmem:[#allocation4 + $0x40] sm:$0xff]   ;;  %v1034_v14 = vld [vmem:[#allocation4 + $0x48] sm:$0xff]   ;;  %v1038_v18 = vld [vmem:[#allocation4 + $0x50] sm:$0xff]  }
  0x49   : > { %s250_s21 = scalar_lea.vmem %s1280_s0, %s881_s22  ;;  %v1031_v11 = vld [vmem:[#allocation4 + $0xc0] sm:$0xff]   ;;  %v1035_v15 = vld [vmem:[#allocation4 + $0xc8] sm:$0xff]   ;;  %v1039_v19 = vld [vmem:[#allocation4 + $0xd0] sm:$0xff]   ;;  %v273_v44 = vsub.s32 0, %v272_v43  ;;  %v281_v45 = vsub.s32 2, %v272_v43  ;;  %v277_v47 = vsub.s32 1, %v272_v43  ;;  %s256_s13 = scalar_lea.vmem %s1285_s5, %s881_s22 }
  0x4a   : > { %v1029_v9 = vld [vmem:[%s250_s21] sm:$0xff]   ;;  %v1036_v16 = vld [vmem:[#allocation4 + $0x8] sm:$0xff]   ;;  %v1040_v20 = vld [vmem:[#allocation4 + $0x10] sm:$0xff]   ;;  %v285_v48 = vsub.s32 3, %v272_v43 }
  0x4b   : > { %343 = vmatpush1.bf16.msra.mxu0 %v1027_v7  ;;  %386 = vmatpush1.bf16.msra.mxu1 %v1028_v8  ;;  %v1032_v12 = vld [vmem:[#allocation4] sm:$0xff]   ;;  %v1037_v17 = vld [vmem:[#allocation4 + $0x88] sm:$0xff]   ;;  %v1041_v21 = vld [vmem:[#allocation4 + $0x90] sm:$0xff]  }
  0x4c   : > { %939 = vmatprep.subr.bf16.mxu0 %v1030_v10  ;;  %961 = vmatprep.subr.bf16.mxu1 %v1031_v11  ;;  %v1033_v13 = vld [vmem:[#allocation4 + $0x80] sm:$0xff]   ;;  %v1042_v22 = vld [vmem:[#allocation4 + $0x58] sm:$0xff]   ;;  %v1050_v30 = vld [vmem:[#allocation4 + $0x68] sm:$0xff]  }
  0x4d   : > { %v1043_v23 = vld [vmem:[#allocation4 + $0xd8] sm:$0xff]   ;;  %v1046_v26 = vld [vmem:[#allocation4 + $0x60] sm:$0xff]   ;;  %v1051_v31 = vld [vmem:[#allocation4 + $0xe8] sm:$0xff]  }
  0x4e   : > { %893 = vmatmul.mubr.msk.bf16.vlgmr.msra.gmra.mrb[0].mxu0 %vm336_vm0, %v1029_v9  ;;  %894 = vmatmul.mubr.msk.bf16.vlgmr.msra.gmra.mrb[0].mxu1 %vm336_vm0, %v1029_v9  ;;  %v1044_v24 = vld [vmem:[#allocation4 + $0x18] sm:$0xff]   ;;  %v1047_v27 = vld [vmem:[#allocation4 + $0xe0] sm:$0xff]   ;;  %v1052_v32 = vld [vmem:[#allocation4 + $0x28] sm:$0xff]  }
  0x4f   : > { %940 = vmatpush3.bf16.msra.mxu0 %v1032_v12  ;;  %962 = vmatpush3.bf16.msra.mxu1 %v1033_v13  ;;  %v1045_v25 = vld [vmem:[#allocation4 + $0x98] sm:$0xff]   ;;  %v1048_v28 = vld [vmem:[#allocation4 + $0x20] sm:$0xff]   ;;  %v1053_v33 = vld [vmem:[#allocation4 + $0xa8] sm:$0xff]  }
  0x50   : > { %941 = vmatprep.subr.bf16.mxu0 %v1034_v14  ;;  %963 = vmatprep.subr.bf16.mxu1 %v1035_v15  ;;  %v1049_v29 = vld [vmem:[#allocation4 + $0xa0] sm:$0xff]   ;;  %v1054_v34 = vld [vmem:[#allocation4 + $0x70] sm:$0xff]   ;;  %v1058_v38 = vld [vmem:[#allocation4 + $0x78] sm:$0xff]  }
  0x51   : > { %v1055_v35 = vld [vmem:[#allocation4 + $0xf0] sm:$0xff]   ;;  %v1059_v39 = vld [vmem:[#allocation4 + $0xf8] sm:$0xff]   ;;  %v269_v46 = vld [vmem:[%s1282_s2] sm:$0xf] }
  0x52   : > { %v1056_v36 = vld [vmem:[#allocation4 + $0x30] sm:$0xff]   ;;  %v1060_v40 = vld [vmem:[#allocation4 + $0x38] sm:$0xff]   ;;  %v274_v49 = vrot.slane %v269_v46, %v273_v44  ;;  %v282_v50 = vrot.slane %v269_v46, %v281_v45  ;;  %v278_v51 = vrot.slane %v269_v46, %v277_v47  ;;  %v286_v52 = vrot.slane %v269_v46, %v285_v48 }
  0x53   : > { %942 = vmatpush3.bf16.msra.mxu0 %v1036_v16  ;;  %964 = vmatpush3.bf16.msra.mxu1 %v1037_v17  ;;  %v1057_v37 = vld [vmem:[#allocation4 + $0xb0] sm:$0xff]   ;;  %v1061_v41 = vld [vmem:[#allocation4 + $0xb8] sm:$0xff]  }
  0x54   : > { %943 = vmatprep.subr.bf16.mxu0 %v1038_v18  ;;  %965 = vmatprep.subr.bf16.mxu1 %v1039_v19  ;;  %v895_v19 = vld [vmem:[%s1284_s4] ss:$0 sm:$0xff] }
  0x57   : > { %944 = vmatpush3.bf16.msra.mxu0 %v1040_v20  ;;  %966 = vmatpush3.bf16.msra.mxu1 %v1041_v21 }
  0x58   : > { %945 = vmatprep.subr.bf16.mxu0 %v1042_v22  ;;  %967 = vmatprep.subr.bf16.mxu1 %v1043_v23 }
  0x5b   : > { %946 = vmatpush3.bf16.msra.mxu0 %v1044_v24  ;;  %968 = vmatpush3.bf16.msra.mxu1 %v1045_v25 }
  0x5c   : > { %947 = vmatprep.subr.bf16.mxu0 %v1046_v26  ;;  %969 = vmatprep.subr.bf16.mxu1 %v1047_v27 }
  0x5f   : > { %948 = vmatpush3.bf16.msra.mxu0 %v1048_v28  ;;  %970 = vmatpush3.bf16.msra.mxu1 %v1049_v29 }
  0x60   : > { %949 = vmatprep.subr.bf16.mxu0 %v1050_v30  ;;  %971 = vmatprep.subr.bf16.mxu1 %v1051_v31 }
  0x63   : > { %950 = vmatpush3.bf16.msra.mxu0 %v1052_v32  ;;  %972 = vmatpush3.bf16.msra.mxu1 %v1053_v33 }
  0x64   : > { %951 = vmatprep.subr.bf16.mxu0 %v1054_v34  ;;  %973 = vmatprep.subr.bf16.mxu1 %v1055_v35 }
  0x67   : > { %952 = vmatpush3.bf16.msra.mxu0 %v1056_v36  ;;  %974 = vmatpush3.bf16.msra.mxu1 %v1057_v37 }
  0x68   : > { %953 = vmatprep.subr.bf16.mxu0 %v1058_v38  ;;  %975 = vmatprep.subr.bf16.mxu1 %v1059_v39 }
  0x6b   : > { %954 = vmatpush3.bf16.msra.mxu0 %v1060_v40  ;;  %976 = vmatpush3.bf16.msra.mxu1 %v1061_v41 }
 0x121   : > { %v374_v53 = vpop.f32.mrb[0].mxu0  ;;  %v417_v54 = vpop.f32.mrb[0].mxu1 }
 0x122   : > { %v375_v55 = vadd.f32 %v374_v53, %v274_v49  ;;  %v418_v56 = vadd.f32 %v417_v54, %v282_v50  ;;  %v376_v57 = vpop.f32.mrb[1].mxu0  ;;  %v419_v58 = vpop.f32.mrb[1].mxu1 }
 0x123   : > { %v377_v59 = vadd.f32 %v376_v57, %v278_v51  ;;  %v420_v60 = vadd.f32 %v419_v58, %v286_v52  ;;  %v378_v61 = vpop.f32.mrb[2].mxu0  ;;  %v421_v62 = vpop.f32.mrb[2].mxu1 }
 0x124   : > { %v428_v63 = vmax.f32 %v418_v56, 0.0  ;;  %v379_v0 = vadd.f32 %v378_v61, %v274_v49  ;;  %v422_v1 = vadd.f32 %v421_v62, %v282_v50  ;;  %v380_v2 = vpop.f32.mrb[3].mxu0  ;;  %v423_v3 = vpop.f32.mrb[3].mxu1  ;;  %v426_v7 = vmax.f32 %v375_v55, 0.0 }
 0x125   : > { %v429_v4 = vmax.f32 %v420_v60, 0.0  ;;  %v381_v5 = vadd.f32 %v380_v2, %v278_v51  ;;  %v424_v6 = vadd.f32 %v423_v3, %v286_v52  ;;  %v427_v10 = vmax.f32 %v377_v59, 0.0 }
 0x126   : > { %v430_v8 = vmax.f32 %v379_v0, 0.0  ;;  %v432_v9 = vmax.f32 %v422_v1, 0.0 }
 0x127   : > { %v431_v11 = vmax.f32 %v381_v5, 0.0  ;;  %v433_v12 = vmax.f32 %v424_v6, 0.0 }
 0x128   : > { %v434_v13 = vpack.c.bf16 %v430_v8, %v426_v7  ;;  %v436_v14 = vpack.c.bf16 %v432_v9, %v428_v63 }
 0x129   : > { %v435_v15 = vpack.c.bf16 %v431_v11, %v427_v10  ;;  %v437_v16 = vpack.c.bf16 %v433_v12, %v429_v4 }
 0x12b   : > { %733 = vmatprep.mubr.bf16.mxu0 %v435_v15  ;;  %774 = vmatprep.mubr.bf16.mxu1 %v437_v16 }
 0x12c   : > { %734 = vmatmul.mubr.bf16.vlgmr.msra.gmra.mrb[4].mxu0 %v434_v13  ;;  %775 = vmatmul.mubr.bf16.vlgmr.msra.gmra.mrb[4].mxu1 %v436_v14 }
 0x1ff   : > { %v955_v17 = vpop.f32.mrb[4].mxu0  ;;  %v977_v18 = vpop.f32.mrb[4].mxu1 }
 0x200   : > { %v956_v20 = vpop.f32.mrb[5].mxu0  ;;  %v978_v21 = vpop.f32.mrb[5].mxu1 }
 0x201   : > { %v957_v22 = vadd.f32 %v956_v20, %v955_v17  ;;  %v979_v23 = vadd.f32 %v978_v21, %v977_v18  ;;  %v958_v24 = vpop.f32.mrb[6].mxu0  ;;  %v980_v25 = vpop.f32.mrb[6].mxu1 }
 0x202   : > { %v959_v26 = vpop.f32.mrb[7].mxu0  ;;  %v981_v27 = vpop.f32.mrb[7].mxu1 }
 0x203   : > { %v736_v28 = vadd.f32 %v957_v22, %v895_v19  ;;  %v960_v29 = vadd.f32 %v959_v26, %v958_v24  ;;  %v982_v30 = vadd.f32 %v981_v27, %v980_v25 }
 0x205   : > { %v777_v31 = vadd.f32 %v979_v23, %v736_v28  ;;  %v739_v32 = vadd.f32 %v960_v29, %v895_v19 }
 0x207   : > { %v780_v33 = vadd.f32 %v982_v30, %v739_v32 }
 0x209   : > { %v937_v34 = vpack.c.bf16 %v780_v33, %v777_v31 }
 0x20b   : > { %938 = vst [vmem:[%s256_s13] sm:$0xff] %v937_v34  }
 0x20c PF: > { %s17_s18 = sadd.s32 1, %s1132_s18  }
 0x20d   : > { %p14_p2 = scmp.ge.s32.totalorder %s17_s18, 4  }
 0x20f   :  { %16 = sbr.rel (!%p14_p2) target bundleno = 2 (0x2), region = 79 }
 0x216   :  { %815 = vsyncpa [#allocation3], 1 }
 0x217   :  { %817 = vsyncpa [#allocation3 + $0x1], 1 }
 0x218   :  { %818 = vsyncpa [#allocation5], 1 }

</bundles_post_ra>
